<compile_context>
chip_gen: v5e
topology: v5e:2x2
jax: 0.10.0
libtpu: 0.0.40
codegen_flags: <defaults>
</compile_context>

<pallas_src>
import jax
import jax.numpy as jnp
from jax.experimental import pallas as pl
from jax.experimental.pallas import tpu as pltpu


def _round_up(v, m):
    return ((v + m - 1) // m) * m


def _pick_tb(B):
    """Batch tile: full extent for tiny B; >=2 grid steps (v7x megacore) and
    <=1024 rows otherwise.  Rounded to 16 rows (bf16 sublane packing)."""
    if B <= 16:
        return B
    tb = _round_up((B + 1) // 2, 16)
    return min(tb, 1024)


def _policy_kernel(x_ref, w1_ref, b1_ref, w2_ref, b2_ref,
                   wh_ref, bh_ref, out_ref):
    """One batch tile: trunk (Linear->ReLU->Linear->ReLU) + all K heads fused.

    Matmul operands are bf16 (MXU-native on v6e/v7x, half the DMA bytes);
    accumulation and all VPU work (bias add, ReLU) stay in f32.
    """
    # (tb, M)bf16 @ (M, H)bf16 -> f32, bias + ReLU in f32
    h = jnp.dot(x_ref[...], w1_ref[...], preferred_element_type=jnp.float32)
    h = jnp.maximum(h + b1_ref[...], 0.0)
    # (tb, H) @ (H, H)
    h = jnp.dot(h.astype(jnp.bfloat16), w2_ref[...],
                preferred_element_type=jnp.float32)
    h = jnp.maximum(h + b2_ref[...], 0.0)
    # all K heads at once, lane-dense padded output: (tb, H) @ (H, KN_pad)
    out_ref[...] = (jnp.dot(h.astype(jnp.bfloat16), wh_ref[...],
                            preferred_element_type=jnp.float32)
                    + bh_ref[...])


@jax.jit
def _policy_forward_fused(x_bf16, w1, b1, w2, b2, wh_fused, bh_fused):
    B, M = x_bf16.shape
    H = w1.shape[1]
    KNp = wh_fused.shape[1]          # already zero-padded to a multiple of 128

    tb = _pick_tb(B)
    grid = (pl.cdiv(B, tb),)

    # Grid-invariant operands: no need for the default double buffer.
    inv = pl.Buffered(1)

    # Advisory cost for XLA's scheduler around this small custom call.
    flops = 2 * B * (M * H + H * H + H * KNp)
    bytes_accessed = (B * M * 2                      # x (bf16)
                      + (M * H + H * H + H * KNp) * 2  # weights (bf16)
                      + (2 * H + KNp) * 4            # biases (f32)
                      + B * KNp * 4)                 # output (f32)

    return pl.pallas_call(
        _policy_kernel,
        out_shape=jax.ShapeDtypeStruct((B, KNp), jnp.float32),
        grid_spec=pltpu.PrefetchScalarGridSpec(
            num_scalar_prefetch=0,
            grid=grid,
            in_specs=[
                pl.BlockSpec((tb, M), lambda i: (i, 0)),                      # x (batch-tiled)
                pl.BlockSpec((M, H), lambda i: (0, 0), pipeline_mode=inv),    # W1
                pl.BlockSpec((1, H), lambda i: (0, 0), pipeline_mode=inv),    # b1
                pl.BlockSpec((H, H), lambda i: (0, 0), pipeline_mode=inv),    # W2
                pl.BlockSpec((1, H), lambda i: (0, 0), pipeline_mode=inv),    # b2
                pl.BlockSpec((H, KNp), lambda i: (0, 0), pipeline_mode=inv),  # fused heads W
                pl.BlockSpec((1, KNp), lambda i: (0, 0), pipeline_mode=inv),  # fused heads b
            ],
            out_specs=pl.BlockSpec((tb, KNp), lambda i: (i, 0)),
        ),
        compiler_params=pltpu.CompilerParams(
            dimension_semantics=("parallel",)),
        cost_estimate=pl.CostEstimate(
            flops=flops, transcendentals=0, bytes_accessed=bytes_accessed),
    )(x_bf16, w1, b1, w2, b2, wh_fused, bh_fused)


def multi_headed_policy_forward(x, params):
    """Returns a list of K arrays of shape (B, num_actions), like the torch module."""
    out = _policy_forward_fused(
        x.astype(jnp.bfloat16),
        params["w1"], params["b1"],
        params["w2"], params["b2"],
        params["wh_fused"], params["bh_fused"],
    )
    B = out.shape[0]
    K, N = params["num_agents"], params["num_actions"]
    out3 = out[:, :K * N].reshape(B, K, N)   # drop lane padding, one reshape
    return [out3[:, k, :] for k in range(K)]


def init_params(key, input_dim, hidden_dim, num_actions, num_agents):
    """Deterministic init mirroring nn.Linear's U(-1/sqrt(fan_in), 1/sqrt(fan_in)).

    Weights stored as (in, out) (PyTorch (out, in) transposed). Kernel copies
    of the weights are bf16; biases stay f32.  Head weights/bias are pre-fused
    and zero-padded to a lane-dense (H, KN_pad) / (1, KN_pad), KN_pad % 128 == 0.
    f32 masters are kept for the pure-JAX reference.
    """
    keys = jax.random.split(key, 6)

    def uniform(k, shape, fan_in):
        bound = 1.0 / jnp.sqrt(float(fan_in))
        return jax.random.uniform(k, shape, jnp.float32, -bound, bound)

    w1 = uniform(keys[0], (input_dim, hidden_dim), input_dim)
    b1 = uniform(keys[1], (1, hidden_dim), input_dim)
    w2 = uniform(keys[2], (hidden_dim, hidden_dim), hidden_dim)
    b2 = uniform(keys[3], (1, hidden_dim), hidden_dim)
    wh = uniform(keys[4], (num_agents, hidden_dim, num_actions), hidden_dim)
    bh = uniform(keys[5], (num_agents, num_actions), hidden_dim)

    # Host-side head fusion: wh_fused[:, k*N + n] == wh[k, :, n], then zero-pad
    # the lane dim to a multiple of 128 so the kernel's stores are unmasked.
    KN = num_agents * num_actions
    KNp = _round_up(KN, 128)
    wh_fused = jnp.transpose(wh, (1, 0, 2)).reshape(hidden_dim, KN)
    wh_fused = jnp.pad(wh_fused, ((0, 0), (0, KNp - KN)))
    bh_fused = jnp.pad(bh.reshape(1, KN), ((0, 0), (0, KNp - KN)))

    return {
        # kernel params (matmul operands bf16, biases f32)
        "w1": w1.astype(jnp.bfloat16), "b1": b1,
        "w2": w2.astype(jnp.bfloat16), "b2": b2,
        "wh_fused": wh_fused.astype(jnp.bfloat16), "bh_fused": bh_fused,
        # f32 masters for the reference path
        "w1_f32": w1, "w2_f32": w2, "wh_f32": wh, "bh_f32": bh,
        "num_agents": num_agents, "num_actions": num_actions,
    }


def reference_forward(x, params):
    """Plain-JAX f32 reference of the PyTorch forward."""
    h = jnp.maximum(x @ params["w1_f32"] + params["b1"], 0.0)
    h = jnp.maximum(h @ params["w2_f32"] + params["b2"], 0.0)
    return [h @ params["wh_f32"][k] + params["bh_f32"][k]
            for k in range(params["num_agents"])]


if __name__ == "__main__":
    # Small shapes consistent with the module:
    batch = 8
    input_dim = 32     # M
    hidden_dim = 32    # H
    num_actions = 8    # N
    num_agents = 4     # K

    key = jax.random.PRNGKey(0)
    k_x, k_p = jax.random.split(key)
    x = jax.random.normal(k_x, (batch, input_dim), jnp.float32)
    params = init_params(k_p, input_dim, hidden_dim, num_actions, num_agents)

    outs = multi_headed_policy_forward(x, params)
    outs = [jax.block_until_ready(o) for o in outs]

    refs = reference_forward(x, params)
    for o, r in zip(outs, refs):
        assert o.shape == (batch, num_actions)
        # bf16 matmul operands vs f32 reference -> ~1e-3-level differences.
        assert jnp.allclose(o, r, atol=3e-2, rtol=3e-2), \
            float(jnp.max(jnp.abs(o.astype(jnp.float32) - r)))

    print("KERNEL_OK")
</pallas_src>

<mosaic_0001>
module attributes {stable_mosaic.version = 11 : i64} {
  func.func @_policy_kernel(%arg0: i32, %arg1: memref<8x32xbf16, #tpu.memory_space<vmem>>, %arg2: memref<32x32xbf16, #tpu.memory_space<vmem>>, %arg3: memref<1x32xf32, #tpu.memory_space<vmem>>, %arg4: memref<32x32xbf16, #tpu.memory_space<vmem>>, %arg5: memref<1x32xf32, #tpu.memory_space<vmem>>, %arg6: memref<32x128xbf16, #tpu.memory_space<vmem>>, %arg7: memref<1x128xf32, #tpu.memory_space<vmem>>, %arg8: memref<8x128xf32, #tpu.memory_space<vmem>>) attributes {dimension_semantics = [#tpu.dimension_semantics<parallel>], iteration_bounds = array<i64: 1>, scalar_prefetch = 0 : i64, scratch_operands = 0 : i64, tpu.core_type = #tpu.core_type<tc>, window_params = [{transform_indices = @transform_0, window_bounds = array<i64: 8, 32>}, {pipeline_mode = #tpu.pipeline_mode<synchronous>, transform_indices = @transform_1, window_bounds = array<i64: 32, 32>}, {pipeline_mode = #tpu.pipeline_mode<synchronous>, transform_indices = @transform_2, window_bounds = array<i64: 1, 32>}, {pipeline_mode = #tpu.pipeline_mode<synchronous>, transform_indices = @transform_3, window_bounds = array<i64: 32, 32>}, {pipeline_mode = #tpu.pipeline_mode<synchronous>, transform_indices = @transform_4, window_bounds = array<i64: 1, 32>}, {pipeline_mode = #tpu.pipeline_mode<synchronous>, transform_indices = @transform_5, window_bounds = array<i64: 32, 128>}, {pipeline_mode = #tpu.pipeline_mode<synchronous>, transform_indices = @transform_6, window_bounds = array<i64: 1, 128>}, {transform_indices = @transform_7, window_bounds = array<i64: 8, 128>}]} {
    %c0 = arith.constant 0 : index
    %c0_0 = arith.constant 0 : index
    %0 = vector.load %arg1[%c0, %c0_0] : memref<8x32xbf16, #tpu.memory_space<vmem>>, vector<8x32xbf16>
    %c0_1 = arith.constant 0 : index
    %c0_2 = arith.constant 0 : index
    %1 = vector.load %arg2[%c0_1, %c0_2] : memref<32x32xbf16, #tpu.memory_space<vmem>>, vector<32x32xbf16>
    %cst = arith.constant dense<0.000000e+00> : vector<8x32xf32>
    %2 = tpu.matmul %0, %1, %cst {dimension_numbers = #tpu.dot_dimension_numbers<[1], [0], [0], [1], [0, 0, 1, 1], [], []>} : vector<8x32xbf16>, vector<32x32xbf16>, vector<8x32xf32> -> vector<8x32xf32>
    %c0_3 = arith.constant 0 : index
    %c0_4 = arith.constant 0 : index
    %3 = vector.load %arg3[%c0_3, %c0_4] : memref<1x32xf32, #tpu.memory_space<vmem>>, vector<1x32xf32>
    %4 = vector.broadcast %3 : vector<1x32xf32> to vector<8x32xf32>
    %5 = arith.addf %2, %4 : vector<8x32xf32>
    %cst_5 = arith.constant 0.000000e+00 : f32
    %6 = vector.broadcast %cst_5 : f32 to vector<8x32xf32>
    %7 = arith.maximumf %5, %6 : vector<8x32xf32>
    %8 = arith.truncf %7 : vector<8x32xf32> to vector<8x32xbf16>
    %c0_6 = arith.constant 0 : index
    %c0_7 = arith.constant 0 : index
    %9 = vector.load %arg4[%c0_6, %c0_7] : memref<32x32xbf16, #tpu.memory_space<vmem>>, vector<32x32xbf16>
    %cst_8 = arith.constant dense<0.000000e+00> : vector<8x32xf32>
    %10 = tpu.matmul %8, %9, %cst_8 {dimension_numbers = #tpu.dot_dimension_numbers<[1], [0], [0], [1], [0, 0, 1, 1], [], []>} : vector<8x32xbf16>, vector<32x32xbf16>, vector<8x32xf32> -> vector<8x32xf32>
    %c0_9 = arith.constant 0 : index
    %c0_10 = arith.constant 0 : index
    %11 = vector.load %arg5[%c0_9, %c0_10] : memref<1x32xf32, #tpu.memory_space<vmem>>, vector<1x32xf32>
    %12 = vector.broadcast %11 : vector<1x32xf32> to vector<8x32xf32>
    %13 = arith.addf %10, %12 : vector<8x32xf32>
    %cst_11 = arith.constant 0.000000e+00 : f32
    %14 = vector.broadcast %cst_11 : f32 to vector<8x32xf32>
    %15 = arith.maximumf %13, %14 : vector<8x32xf32>
    %16 = arith.truncf %15 : vector<8x32xf32> to vector<8x32xbf16>
    %c0_12 = arith.constant 0 : index
    %c0_13 = arith.constant 0 : index
    %17 = vector.load %arg6[%c0_12, %c0_13] : memref<32x128xbf16, #tpu.memory_space<vmem>>, vector<32x128xbf16>
    %cst_14 = arith.constant dense<0.000000e+00> : vector<8x128xf32>
    %18 = tpu.matmul %16, %17, %cst_14 {dimension_numbers = #tpu.dot_dimension_numbers<[1], [0], [0], [1], [0, 0, 1, 1], [], []>} : vector<8x32xbf16>, vector<32x128xbf16>, vector<8x128xf32> -> vector<8x128xf32>
    %c0_15 = arith.constant 0 : index
    %c0_16 = arith.constant 0 : index
    %19 = vector.load %arg7[%c0_15, %c0_16] : memref<1x128xf32, #tpu.memory_space<vmem>>, vector<1x128xf32>
    %20 = vector.broadcast %19 : vector<1x128xf32> to vector<8x128xf32>
    %21 = arith.addf %18, %20 : vector<8x128xf32>
    %c0_17 = arith.constant 0 : index
    %c0_18 = arith.constant 0 : index
    %22 = vector.load %arg8[%c0_17, %c0_18] : memref<8x128xf32, #tpu.memory_space<vmem>>, vector<8x128xf32>
    tpu.vector_store %arg8[%c0_17, %c0_18], %21 {strides = array<i32>} : memref<8x128xf32, #tpu.memory_space<vmem>>, vector<8x128xf32>,
    return
  }
  func.func @transform_0(%arg0: i32) -> (i32, i32) {
    %c0_i32 = arith.constant 0 : i32
    %c0_i32_0 = arith.constant 0 : i32
    return %arg0, %c0_i32 : i32, i32
  }
  func.func @transform_1(%arg0: i32) -> (i32, i32) {
    %c0_i32 = arith.constant 0 : i32
    %c0_i32_0 = arith.constant 0 : i32
    %c0_i32_1 = arith.constant 0 : i32
    return %c0_i32, %c0_i32_0 : i32, i32
  }
  func.func @transform_2(%arg0: i32) -> (i32, i32) {
    %c0_i32 = arith.constant 0 : i32
    %c0_i32_0 = arith.constant 0 : i32
    %c0_i32_1 = arith.constant 0 : i32
    return %c0_i32, %c0_i32_0 : i32, i32
  }
  func.func @transform_3(%arg0: i32) -> (i32, i32) {
    %c0_i32 = arith.constant 0 : i32
    %c0_i32_0 = arith.constant 0 : i32
    %c0_i32_1 = arith.constant 0 : i32
    return %c0_i32, %c0_i32_0 : i32, i32
  }
  func.func @transform_4(%arg0: i32) -> (i32, i32) {
    %c0_i32 = arith.constant 0 : i32
    %c0_i32_0 = arith.constant 0 : i32
    %c0_i32_1 = arith.constant 0 : i32
    return %c0_i32, %c0_i32_0 : i32, i32
  }
  func.func @transform_5(%arg0: i32) -> (i32, i32) {
    %c0_i32 = arith.constant 0 : i32
    %c0_i32_0 = arith.constant 0 : i32
    %c0_i32_1 = arith.constant 0 : i32
    return %c0_i32, %c0_i32_0 : i32, i32
  }
  func.func @transform_6(%arg0: i32) -> (i32, i32) {
    %c0_i32 = arith.constant 0 : i32
    %c0_i32_0 = arith.constant 0 : i32
    %c0_i32_1 = arith.constant 0 : i32
    return %c0_i32, %c0_i32_0 : i32, i32
  }
  func.func @transform_7(%arg0: i32) -> (i32, i32) {
    %c0_i32 = arith.constant 0 : i32
    %c0_i32_0 = arith.constant 0 : i32
    return %arg0, %c0_i32 : i32, i32
  }
}

</mosaic_0001>

<bundles_post_ra>
// kernel: _policy_forward_fused.1
= control target key start
LH: loop header
LB: loop body
LE: loop exit
PB: predicated region body
PF: predicated region fallthrough
CT: control target
= control target key end

     0   :  { %12 = vsyncpa [#allocation3], 0  ;;  %s468_s0 = inlined_call_operand.hbm [shape: bf16[8,32], index: 0, kind: input, shape index: {}]   ;;  %s469_s1 = inlined_call_operand.hbm [shape: bf16[32,32], index: 1, kind: input, shape index: {}]   ;;  %s470_s2 = inlined_call_operand.vmem [shape: f32[1,32], index: 2, kind: input, shape index: {}]   ;;  %s471_s3 = inlined_call_operand.hbm [shape: bf16[32,32], index: 3, kind: input, shape index: {}]   ;;  %s472_s4 = inlined_call_operand.vmem [shape: f32[1,32], index: 4, kind: input, shape index: {}]   ;;  %s473_s5 = inlined_call_operand.hbm [shape: bf16[32,128], index: 5, kind: input, shape index: {}]   ;;  %s474_s6 = inlined_call_operand.vmem [shape: f32[1,128], index: 6, kind: input, shape index: {}]   ;;  %s475_s7 = inlined_call_operand.hbm [shape: f32[8,128], index: 7, kind: output, shape index: {}]  }
   0x1   :  { %13 = vsyncpa [#allocation6], 0 }
   0x2   :  { %14 = vsyncpa [#allocation9], 0  ;;  %s31_s26 = sshll.u32 %s469_s1, 4  ;;  %s32_s26 = int_to_ptr.hbm [resolvable:$true] %s31_s26 }
   0x3   :  { %15 = vsyncpa [#allocation4], 0  ;;  %s394_s27 = smov [#allocation5]   ;;  %s21_s8 = sshll.u32 %s468_s0, 4  ;;  %s22_s8 = int_to_ptr.hbm [resolvable:$true] %s21_s8 }
   0x4   :  { %s33_s28 = sshll.u32 %s394_s27, 4  ;;  %s395_s9 = smov 64   ;;  %s34_s28 = int_to_ptr.vmem [resolvable:$true] %s33_s28 }
   0x5   :  { %s396_s10 = smov 4   ;;  %s397_s11 = smov [#allocation2]  }
   0x6   :  { %39 = dma.hbm_to_vmem [thread:$0]  %s32_s26, 256, %s34_s28, [#allocation6], %s395_s9, %s395_s9, %s396_s10  }
   0x7   :  { %s23_s12 = sshll.u32 %s397_s11, 4  ;;  %s46_s15 = sshll.u32 %s471_s3, 4  ;;  %s24_s12 = int_to_ptr.vmem [resolvable:$true] %s23_s12  ;;  %s47_s15 = int_to_ptr.hbm [resolvable:$true] %s46_s15 }
   0x8   :  { %26 = dma.hbm_to_vmem [thread:$0]  %s22_s8, 64, %s24_s12, [#allocation3]  }
   0x9   :  { %s61_s17 = sshll.u32 %s473_s5, 4  ;;  %s398_s18 = smov [#allocation7]   ;;  %s62_s17 = int_to_ptr.hbm [resolvable:$true] %s61_s17 }
   0xa   :  { %s48_s19 = sshll.u32 %s398_s18, 4  ;;  %s399_s0 = smov [#allocation8]   ;;  %s49_s19 = int_to_ptr.vmem [resolvable:$true] %s48_s19 }
   0xb   :  { %54 = dma.hbm_to_vmem [thread:$0]  %s47_s15, 256, %s49_s19, [#allocation6], %s395_s9, %s395_s9, %s396_s10  }
   0xc   :  { %s63_s20 = sshll.u32 %s399_s0, 4  ;;  %s64_s20 = int_to_ptr.vmem [resolvable:$true] %s63_s20 }
   0xd   :  { %69 = dma.hbm_to_vmem [thread:$0]  %s62_s17, 256, %s64_s20, [#allocation9], %s395_s9, %s395_s9, %s396_s10  }
   0xe   :  { %386 = dma.done.wait [#allocation3], 64  }
   0xf   :  { %387 = vsyncadd [#allocation3], 4294967232 }
  0x10   :  { %388 = dma.done.wait [#allocation6], 512  }
  0x11   :  { %389 = vsyncadd [#allocation6], 4294966784 }
  0x12   :  { %390 = dma.done.wait [#allocation9], 256  }
  0x13   :  { %391 = vsyncadd [#allocation9], 4294967040  ;;  %v251_v0 = vld [vmem:[#allocation5 + $0x8] sm:$0xff]  ;;  %v250_v1 = vld [vmem:[#allocation5] sm:$0xff]  ;;  %vm110_vm0 = vcmask 261120   ;;  %s400_s24 = smov [#allocation10]  }
  0x14   :  { %120 = vmatpush.bf16.msra.mxu0 %v251_v0  ;;  %v89_v2 = vld [vmem:[#allocation2] sm:$0xf]  ;;  %v252_v4 = vld [vmem:[#allocation7] sm:$0xff]  ;;  %v255_v11 = vld [vmem:[#allocation8 + $0x8] sm:$0xff]  ;;  %s209_s25 = sshll.u32 %s400_s24, 4  ;;  %s211_s28 = sshll.u32 %s475_s7, 4  ;;  %s210_s25 = int_to_ptr.vmem [resolvable:$true] %s209_s25  ;;  %s212_s28 = int_to_ptr.hbm [resolvable:$true] %s211_s28 }
  0x15   :  { %v253_v3 = vld [vmem:[#allocation7 + $0x8] sm:$0xff]  ;;  %196 = vmatpush.bf16.msra.mxu2 %v255_v11  ;;  %v254_v12 = vld [vmem:[#allocation8] sm:$0xff] }
  0x16   :  { %158 = vmatpush.bf16.msra.mxu1 %v253_v3  ;;  %v263_v5 = vld [vmem:[%s470_s2] ss:$0 sm:$0xff] }
  0x17   :  { %v264_v13 = vld [vmem:[%s472_s4] ss:$0 sm:$0xff] }
  0x18   :  { %121 = vmatpush.bf16.msra.mxu0 %v250_v1  ;;  %v265_v19 = vld [vmem:[%s474_s6] ss:$0 sm:$0xff] }
  0x19   :  { %197 = vmatpush.bf16.msra.mxu2 %v254_v12 }
  0x1a   :  { %159 = vmatpush.bf16.msra.mxu1 %v252_v4 }
  0x1b   :  { %231 = vmatmul.msk.bf16.vlgmr.msra.gmra.mxu0 %vm110_vm0, %v89_v2 }
  0x98   :  { %v123_v6 = vpop.f32.mrf.mxu0 }
  0x99   :  { %v124_v7 = vadd.f32 %v263_v5, %v123_v6 }
  0x9b   :  { %v127_v8 = vmax.f32 %v124_v7, 0.0 }
  0x9d   :  { %v128_v9 = vpack.c.bf16 %v127_v8, %v127_v8 }
  0x9f   :  { %240 = vmatmul.msk.bf16.vlgmr.msra.gmra.mxu1 %vm110_vm0, %v128_v9 }
  0xa0   :  { %v125_v10 = vpop.f32.mrf.mxu0 }
 0x11c   :  { %v161_v14 = vpop.f32.mrf.mxu1 }
 0x11d   :  { %v162_v15 = vadd.f32 %v264_v13, %v161_v14 }
 0x11f   :  { %v165_v16 = vmax.f32 %v162_v15, 0.0 }
 0x121   :  { %v166_v17 = vpack.c.bf16 %v165_v16, %v165_v16 }
 0x123   :  { %249 = vmatmul.msk.bf16.vlgmr.msra.gmra.mxu2 %vm110_vm0, %v166_v17 }
 0x124   :  { %v163_v18 = vpop.f32.mrf.mxu1 }
 0x1a6   :  { %v199_v20 = vpop.f32.mrf.mxu2 }
 0x1a7   :  { %v200_v21 = vadd.f32 %v265_v19, %v199_v20 }
 0x1a9   :  { %203 = vst [vmem:[#allocation10] sm:$0xff] %v200_v21 }
 0x1aa   :  { %214 = dma.vmem_to_hbm [thread:$0]  %s210_s25, 128, %s212_s28, [#allocation4]  }
 0x1ae   :  { %v201_v22 = vpop.f32.mrf.mxu2 }
 0x1af   :  { %392 = dma.done.wait [#allocation4], 128  }
 0x1b0   :  { %393 = vsyncadd [#allocation4], 4294967168 }
 0x1b1   :  { %219 = vsyncpa [#allocation3], 1 }
 0x1b2   :  { %220 = vsyncpa [#allocation6], 1 }
 0x1b3   :  { %221 = vsyncpa [#allocation9], 1 }
 0x1b4   :  { %222 = vsyncpa [#allocation4], 1 }

</bundles_post_ra>
